<compile_context>
chip_gen: v6e
topology: v6e:2x2x1
jax: 0.10.0
libtpu: 0.0.40
codegen_flags: <defaults>
</compile_context>

<pallas_src>
import functools

import jax
import jax.numpy as jnp
from jax.experimental import pallas as pl
from jax.experimental.pallas import tpu as pltpu


def _round_up(x: int, m: int) -> int:
    return ((x + m - 1) // m) * m


def _generalized_pooling_kernel(x_ref, w1t_ref, b1_ref, w2t_ref, b2_ref,
                                emb_ref, f_ref, *, tb, seq_p, seq_valid, dp):
    # x_ref: (tb*seq_p, dp) rows for `tb` batch elements of the current step.
    x = x_ref[...]                                          # input dtype
    x_mm = x if x.dtype == jnp.bfloat16 else x.astype(jnp.bfloat16)

    # fc1 + relu: bf16 operands, f32 accumulation on the MXU.
    h1 = jnp.dot(x_mm, w1t_ref[...],
                 preferred_element_type=jnp.float32) + b1_ref[...]
    f = jnp.maximum(h1, 0.0)                                # (tb*Sp, Dp) f32

    # fc2: bf16 operands, f32 accumulation.
    logits = jnp.dot(f.astype(jnp.bfloat16), w2t_ref[...],
                     preferred_element_type=jnp.float32) + b2_ref[...]

    # Per-sentence softmax over the sequence axis + weighted sum over sequence.
    # emb = sum_S(softmax(logits) * x) = (sum_S e*x) / (sum_S e); the softmax
    # matrix itself is never materialized.  Reshapes are free sublane regroups
    # because seq_p % 8 == 0 and dp % 128 == 0.
    l3 = logits.reshape(tb, seq_p, dp)
    x3 = x.reshape(tb, seq_p, dp)
    m = jnp.max(l3, axis=1, keepdims=True)                  # (tb, 1, Dp)
    e = jnp.exp(l3 - m)                                     # (tb, Sp, Dp) f32
    if seq_valid < seq_p:
        # Mask padded sequence positions out of the softmax denominator.
        pos = jax.lax.broadcasted_iota(jnp.int32, (tb, seq_p, dp), 1)
        e = jnp.where(pos < seq_valid, e, 0.0)
    denom = jnp.sum(e, axis=1)                              # (tb, Dp)
    num = jnp.sum(e * x3, axis=1)                           # (tb, Dp) f32
    emb = num / denom                                       # exact division

    emb_ref[...] = emb.astype(emb_ref.dtype)                # dense (tb, Dp)
    f_ref[...] = f.astype(f_ref.dtype)                      # dense (tb*Sp, Dp)


def _select_tb_and_vmem(B, Sp, Dp, in_itemsize, out_itemsize):
    """Pick the per-step batch tile and an explicit VMEM budget."""
    try:
        cap = int(getattr(pltpu.get_tpu_info(), "vmem_capacity_bytes",
                          64 * 1024 * 1024))
    except Exception:  # not on TPU / API unavailable -> conservative (v7x)
        cap = 64 * 1024 * 1024
    budget = int(cap * 0.85)

    def est(tb):
        rows = tb * Sp
        io = 2 * rows * Dp * (in_itemsize + out_itemsize)   # x + f, double-buf
        io += 2 * tb * Dp * out_itemsize                    # emb block
        w = 2 * Dp * Dp * 2 + 2 * Dp * 4                    # bf16 W + f32 b
        temps = 6 * rows * Dp * 4                           # h1/f/logits/e/e*x
        return io + w + temps

    tb = max(8, _round_up(-(-256 // Sp), 8))    # fill MXU M dim: rows >= 256
    tb = min(tb, _round_up(B, 8))               # never over-pad the batch
    if B > 8:                                   # keep >= 2 grid steps (v7x TCs)
        tb = min(tb, max(8, _round_up((B + 1) // 2, 8)))
    while tb > 8 and est(tb) > budget:          # stay inside the VMEM budget
        tb -= 8
    vmem_limit = min(max(est(tb) + (4 << 20), 32 << 20), budget)
    return tb, vmem_limit


def generalized_pooling(token_embeddings, w1, b1, w2, b2):
    """token_embeddings: (B, S, D); w1/w2: (D, D) PyTorch (out, in); b1/b2: (D,).

    Returns (sentence_embedding (B, D), sentence_attention (B, S, D) == f).
    """
    B, S, D = token_embeddings.shape
    dtype = token_embeddings.dtype
    itemsize = jnp.dtype(dtype).itemsize

    Dp = _round_up(D, 128)                  # lane-dense hidden dim
    Sp = _round_up(S, 8)                    # sublane-aligned sequence
    tb, vmem_limit = _select_tb_and_vmem(B, Sp, Dp, itemsize, itemsize)
    Bp = _round_up(B, tb)
    rows = tb * Sp                          # matmul M rows per grid step

    # Pad only when needed (avoids an extra HBM pass on aligned shapes).
    if (Bp, Sp, Dp) != (B, S, D):
        x_in = jnp.pad(token_embeddings,
                       ((0, Bp - B), (0, Sp - S), (0, Dp - D)))
    else:
        x_in = token_embeddings
    x2d = x_in.reshape(Bp * Sp, Dp)

    # Pre-transpose + pre-cast weights once in the wrapper (free XLA ops).
    w1t = jnp.transpose(w1)
    w2t = jnp.transpose(w2)
    if Dp != D:
        w1t = jnp.pad(w1t, ((0, Dp - D), (0, Dp - D)))
        w2t = jnp.pad(w2t, ((0, Dp - D), (0, Dp - D)))
    w1t = w1t.astype(jnp.bfloat16)
    w2t = w2t.astype(jnp.bfloat16)
    b1p = (jnp.pad(b1, (0, Dp - D)) if Dp != D else b1)
    b2p = (jnp.pad(b2, (0, Dp - D)) if Dp != D else b2)
    b1p = b1p.reshape(1, Dp).astype(jnp.float32)
    b2p = b2p.reshape(1, Dp).astype(jnp.float32)

    kernel = functools.partial(_generalized_pooling_kernel,
                               tb=tb, seq_p=Sp, seq_valid=S, dp=Dp)

    def _const_spec(shape, single_buffer):
        # Constant across the grid: single-buffer to halve its VMEM footprint.
        if single_buffer:
            return pl.BlockSpec(shape, lambda b: (0, 0),
                                pipeline_mode=pl.Buffered(1))
        return pl.BlockSpec(shape, lambda b: (0, 0))

    def _build(single_buffer_weights):
        grid_spec = pltpu.PrefetchScalarGridSpec(
            num_scalar_prefetch=0,
            grid=(Bp // tb,),
            in_specs=[
                pl.BlockSpec((rows, Dp), lambda b: (b, 0)),   # tokens (tb*Sp,Dp)
                _const_spec((Dp, Dp), single_buffer_weights),  # W1.T (bf16)
                _const_spec((1, Dp), single_buffer_weights),   # b1
                _const_spec((Dp, Dp), single_buffer_weights),  # W2.T (bf16)
                _const_spec((1, Dp), single_buffer_weights),   # b2
            ],
            out_specs=[
                pl.BlockSpec((tb, Dp), lambda b: (b, 0)),      # sentence_embedding
                pl.BlockSpec((rows, Dp), lambda b: (b, 0)),    # f (sentence_attention)
            ],
        )
        return pl.pallas_call(
            kernel,
            out_shape=(
                jax.ShapeDtypeStruct((Bp, Dp), dtype),
                jax.ShapeDtypeStruct((Bp * Sp, Dp), dtype),
            ),
            grid_spec=grid_spec,
            compiler_params=pltpu.CompilerParams(
                dimension_semantics=("parallel",),   # shard batch over TCs
                vmem_limit_bytes=int(vmem_limit)),
        )

    try:
        emb_pad, f_pad = _build(True)(x2d, w1t, b1p, w2t, b2p)
    except Exception:
        # Fallback: identical kernel with default (double) buffering for the
        # constant weight blocks, in case pl.Buffered(1) is unsupported.
        emb_pad, f_pad = _build(False)(x2d, w1t, b1p, w2t, b2p)

    emb = emb_pad if (Bp == B and Dp == D) else emb_pad[:B, :D]
    f3 = f_pad.reshape(Bp, Sp, Dp)
    f = f3 if (Bp == B and Sp == S and Dp == D) else f3[:B, :S, :D]
    return emb, f


def generalized_pooling_ref(token_embeddings, w1, b1, w2, b2, *,
                            matmul_dtype=None):
    """Pure-JAX reference matching the PyTorch module.

    matmul_dtype=jnp.bfloat16 reproduces the kernel's mixed-precision recipe
    (bf16 operands, f32 accumulation) for a tight numerical comparison.
    """
    x = token_embeddings
    if matmul_dtype is not None:
        xm, w1m, w2m = (x.astype(matmul_dtype), w1.astype(matmul_dtype),
                        w2.astype(matmul_dtype))
    else:
        xm, w1m, w2m = x, w1, w2
    h1 = jnp.einsum("bsd,ed->bse", xm, w1m,
                    preferred_element_type=jnp.float32) + b1
    f = jax.nn.relu(h1)
    fm = f.astype(matmul_dtype) if matmul_dtype is not None else f
    logits = jnp.einsum("bsd,ed->bse", fm, w2m,
                        preferred_element_type=jnp.float32) + b2
    attn = jax.nn.softmax(logits, axis=-2)
    emb = jnp.sum(attn * x, axis=-2)
    return emb, f


if __name__ == "__main__":
    key = jax.random.PRNGKey(0)
    B, S, D = 2, 8, 32  # batch, sequence, word_embedding_dimension

    k_x, k_w1, k_b1, k_w2, k_b2 = jax.random.split(key, 5)
    token_embeddings = jax.random.normal(k_x, (B, S, D), dtype=jnp.float32)

    # Deterministic parameter init mimicking nn.Linear default (uniform +-1/sqrt(D)).
    bound = 1.0 / jnp.sqrt(jnp.float32(D))
    w1 = jax.random.uniform(k_w1, (D, D), jnp.float32, -bound, bound)
    b1 = jax.random.uniform(k_b1, (D,), jnp.float32, -bound, bound)
    w2 = jax.random.uniform(k_w2, (D, D), jnp.float32, -bound, bound)
    b2 = jax.random.uniform(k_b2, (D,), jnp.float32, -bound, bound)

    emb, attn = generalized_pooling(token_embeddings, w1, b1, w2, b2)
    emb, attn = jax.block_until_ready((emb, attn))

    assert emb.shape == (B, D)
    assert attn.shape == (B, S, D)

    # f32 reference (the exact PyTorch math) -- loose tolerance because the
    # kernel runs the matmuls with bf16 operands (f32 accumulation).
    emb_r32, f_r32 = generalized_pooling_ref(token_embeddings, w1, b1, w2, b2)
    assert jnp.allclose(attn, f_r32, atol=3e-2, rtol=3e-2)
    assert jnp.allclose(emb, emb_r32, atol=3e-2, rtol=3e-2)

    # bf16-matmul reference (same numeric recipe as the kernel) -- tight check.
    emb_rbf, f_rbf = generalized_pooling_ref(token_embeddings, w1, b1, w2, b2,
                                             matmul_dtype=jnp.bfloat16)
    assert jnp.allclose(attn, f_rbf, atol=5e-3, rtol=5e-3)
    assert jnp.allclose(emb, emb_rbf, atol=5e-3, rtol=5e-3)

    print("KERNEL_OK")
</pallas_src>

<mosaic_0001>
module attributes {stable_mosaic.version = 11 : i64} {
  func.func @_generalized_pooling_kernel(%arg0: i32, %arg1: memref<64x128xf32, #tpu.memory_space<vmem>>, %arg2: memref<128x128xbf16, #tpu.memory_space<vmem>>, %arg3: memref<1x128xf32, #tpu.memory_space<vmem>>, %arg4: memref<128x128xbf16, #tpu.memory_space<vmem>>, %arg5: memref<1x128xf32, #tpu.memory_space<vmem>>, %arg6: memref<8x128xf32, #tpu.memory_space<vmem>>, %arg7: memref<64x128xf32, #tpu.memory_space<vmem>>) attributes {dimension_semantics = [#tpu.dimension_semantics<parallel>], iteration_bounds = array<i64: 1>, scalar_prefetch = 0 : i64, scratch_operands = 0 : i64, tpu.core_type = #tpu.core_type<tc>, window_params = [{transform_indices = @transform_0, window_bounds = array<i64: 64, 128>}, {pipeline_mode = #tpu.pipeline_mode<synchronous>, transform_indices = @transform_1, window_bounds = array<i64: 128, 128>}, {pipeline_mode = #tpu.pipeline_mode<synchronous>, transform_indices = @transform_2, window_bounds = array<i64: 1, 128>}, {pipeline_mode = #tpu.pipeline_mode<synchronous>, transform_indices = @transform_3, window_bounds = array<i64: 128, 128>}, {pipeline_mode = #tpu.pipeline_mode<synchronous>, transform_indices = @transform_4, window_bounds = array<i64: 1, 128>}, {transform_indices = @transform_5, window_bounds = array<i64: 8, 128>}, {transform_indices = @transform_6, window_bounds = array<i64: 64, 128>}]} {
    %c0 = arith.constant 0 : index
    %c0_0 = arith.constant 0 : index
    %0 = vector.load %arg1[%c0, %c0_0] : memref<64x128xf32, #tpu.memory_space<vmem>>, vector<64x128xf32>
    %1 = arith.truncf %0 : vector<64x128xf32> to vector<64x128xbf16>
    %c0_1 = arith.constant 0 : index
    %c0_2 = arith.constant 0 : index
    %2 = vector.load %arg2[%c0_1, %c0_2] : memref<128x128xbf16, #tpu.memory_space<vmem>>, vector<128x128xbf16>
    %cst = arith.constant dense<0.000000e+00> : vector<64x128xf32>
    %3 = tpu.matmul %1, %2, %cst {dimension_numbers = #tpu.dot_dimension_numbers<[1], [0], [0], [1], [0, 0, 1, 1], [], []>} : vector<64x128xbf16>, vector<128x128xbf16>, vector<64x128xf32> -> vector<64x128xf32>
    %c0_3 = arith.constant 0 : index
    %c0_4 = arith.constant 0 : index
    %4 = vector.load %arg3[%c0_3, %c0_4] : memref<1x128xf32, #tpu.memory_space<vmem>>, vector<1x128xf32>
    %5 = vector.broadcast %4 : vector<1x128xf32> to vector<64x128xf32>
    %6 = arith.addf %3, %5 : vector<64x128xf32>
    %cst_5 = arith.constant 0.000000e+00 : f32
    %7 = vector.broadcast %cst_5 : f32 to vector<64x128xf32>
    %8 = arith.maximumf %6, %7 : vector<64x128xf32>
    %9 = arith.truncf %8 : vector<64x128xf32> to vector<64x128xbf16>
    %c0_6 = arith.constant 0 : index
    %c0_7 = arith.constant 0 : index
    %10 = vector.load %arg4[%c0_6, %c0_7] : memref<128x128xbf16, #tpu.memory_space<vmem>>, vector<128x128xbf16>
    %cst_8 = arith.constant dense<0.000000e+00> : vector<64x128xf32>
    %11 = tpu.matmul %9, %10, %cst_8 {dimension_numbers = #tpu.dot_dimension_numbers<[1], [0], [0], [1], [0, 0, 1, 1], [], []>} : vector<64x128xbf16>, vector<128x128xbf16>, vector<64x128xf32> -> vector<64x128xf32>
    %c0_9 = arith.constant 0 : index
    %c0_10 = arith.constant 0 : index
    %12 = vector.load %arg5[%c0_9, %c0_10] : memref<1x128xf32, #tpu.memory_space<vmem>>, vector<1x128xf32>
    %13 = vector.broadcast %12 : vector<1x128xf32> to vector<64x128xf32>
    %14 = arith.addf %11, %13 : vector<64x128xf32>
    %15 = vector.shape_cast %14 : vector<64x128xf32> to vector<8x8x128xf32>
    %16 = vector.shape_cast %0 : vector<64x128xf32> to vector<8x8x128xf32>
    %cst_11 = arith.constant dense<0xFF800000> : vector<8x128xf32>
    %17 = vector.multi_reduction <maximumf>, %15, %cst_11 [1] : vector<8x8x128xf32> to vector<8x128xf32>
    %18 = vector.shape_cast %17 : vector<8x128xf32> to vector<8x1x128xf32>
    %19 = vector.broadcast %18 : vector<8x1x128xf32> to vector<8x8x128xf32>
    %20 = arith.subf %15, %19 : vector<8x8x128xf32>
    %21 = math.exp %20 : vector<8x8x128xf32>
    %cst_12 = arith.constant dense<0.000000e+00> : vector<8x128xf32>
    %22 = vector.multi_reduction <add>, %21, %cst_12 [1] : vector<8x8x128xf32> to vector<8x128xf32>
    %23 = arith.mulf %21, %16 : vector<8x8x128xf32>
    %cst_13 = arith.constant dense<0.000000e+00> : vector<8x128xf32>
    %24 = vector.multi_reduction <add>, %23, %cst_13 [1] : vector<8x8x128xf32> to vector<8x128xf32>
    %25 = arith.divf %24, %22 : vector<8x128xf32>
    %c0_14 = arith.constant 0 : index
    %c0_15 = arith.constant 0 : index
    %26 = vector.load %arg6[%c0_14, %c0_15] : memref<8x128xf32, #tpu.memory_space<vmem>>, vector<8x128xf32>
    tpu.vector_store %arg6[%c0_14, %c0_15], %25 {strides = array<i32>} : memref<8x128xf32, #tpu.memory_space<vmem>>, vector<8x128xf32>,
    %c0_16 = arith.constant 0 : index
    %c0_17 = arith.constant 0 : index
    %27 = vector.load %arg7[%c0_16, %c0_17] : memref<64x128xf32, #tpu.memory_space<vmem>>, vector<64x128xf32>
    tpu.vector_store %arg7[%c0_16, %c0_17], %8 {strides = array<i32>} : memref<64x128xf32, #tpu.memory_space<vmem>>, vector<64x128xf32>,
    return
  }
  func.func @transform_0(%arg0: i32) -> (i32, i32) {
    %c0_i32 = arith.constant 0 : i32
    %c0_i32_0 = arith.constant 0 : i32
    return %arg0, %c0_i32 : i32, i32
  }
  func.func @transform_1(%arg0: i32) -> (i32, i32) {
    %c0_i32 = arith.constant 0 : i32
    %c0_i32_0 = arith.constant 0 : i32
    %c0_i32_1 = arith.constant 0 : i32
    return %c0_i32, %c0_i32_0 : i32, i32
  }
  func.func @transform_2(%arg0: i32) -> (i32, i32) {
    %c0_i32 = arith.constant 0 : i32
    %c0_i32_0 = arith.constant 0 : i32
    %c0_i32_1 = arith.constant 0 : i32
    return %c0_i32, %c0_i32_0 : i32, i32
  }
  func.func @transform_3(%arg0: i32) -> (i32, i32) {
    %c0_i32 = arith.constant 0 : i32
    %c0_i32_0 = arith.constant 0 : i32
    %c0_i32_1 = arith.constant 0 : i32
    return %c0_i32, %c0_i32_0 : i32, i32
  }
  func.func @transform_4(%arg0: i32) -> (i32, i32) {
    %c0_i32 = arith.constant 0 : i32
    %c0_i32_0 = arith.constant 0 : i32
    %c0_i32_1 = arith.constant 0 : i32
    return %c0_i32, %c0_i32_0 : i32, i32
  }
  func.func @transform_5(%arg0: i32) -> (i32, i32) {
    %c0_i32 = arith.constant 0 : i32
    %c0_i32_0 = arith.constant 0 : i32
    return %arg0, %c0_i32 : i32, i32
  }
  func.func @transform_6(%arg0: i32) -> (i32, i32) {
    %c0_i32 = arith.constant 0 : i32
    %c0_i32_0 = arith.constant 0 : i32
    return %arg0, %c0_i32 : i32, i32
  }
}

module attributes {stable_mosaic.version = 11 : i64} {
  func.func @_generalized_pooling_kernel(%arg0: i32, %arg1: memref<64x128xf32, #tpu.memory_space<vmem>>, %arg2: memref<128x128xbf16, #tpu.memory_space<vmem>>, %arg3: memref<1x128xf32, #tpu.memory_space<vmem>>, %arg4: memref<128x128xbf16, #tpu.memory_space<vmem>>, %arg5: memref<1x128xf32, #tpu.memory_space<vmem>>, %arg6: memref<8x128xf32, #tpu.memory_space<vmem>>, %arg7: memref<64x128xf32, #tpu.memory_space<vmem>>) attributes {dimension_semantics = [#tpu.dimension_semantics<parallel>], iteration_bounds = array<i64: 1>, scalar_prefetch = 0 : i64, scratch_operands = 0 : i64, tpu.core_type = #tpu.core_type<tc>, window_params = [{transform_indices = @transform_0, window_bounds = array<i64: 64, 128>}, {pipeline_mode = #tpu.pipeline_mode<synchronous>, transform_indices = @transform_1, window_bounds = array<i64: 128, 128>}, {pipeline_mode = #tpu.pipeline_mode<synchronous>, transform_indices = @transform_2, window_bounds = array<i64: 1, 128>}, {pipeline_mode = #tpu.pipeline_mode<synchronous>, transform_indices = @transform_3, window_bounds = array<i64: 128, 128>}, {pipeline_mode = #tpu.pipeline_mode<synchronous>, transform_indices = @transform_4, window_bounds = array<i64: 1, 128>}, {transform_indices = @transform_5, window_bounds = array<i64: 8, 128>}, {transform_indices = @transform_6, window_bounds = array<i64: 64, 128>}]} {
    %c0 = arith.constant 0 : index
    %c0_0 = arith.constant 0 : index
    %0 = vector.load %arg1[%c0, %c0_0] : memref<64x128xf32, #tpu.memory_space<vmem>>, vector<64x128xf32>
    %1 = arith.truncf %0 : vector<64x128xf32> to vector<64x128xbf16>
    %c0_1 = arith.constant 0 : index
    %c0_2 = arith.constant 0 : index
    %2 = vector.load %arg2[%c0_1, %c0_2] : memref<128x128xbf16, #tpu.memory_space<vmem>>, vector<128x128xbf16>
    %cst = arith.constant dense<0.000000e+00> : vector<64x128xf32>
    %3 = tpu.matmul %1, %2, %cst {dimension_numbers = #tpu.dot_dimension_numbers<[1], [0], [0], [1], [0, 0, 1, 1], [], []>} : vector<64x128xbf16>, vector<128x128xbf16>, vector<64x128xf32> -> vector<64x128xf32>
    %c0_3 = arith.constant 0 : index
    %c0_4 = arith.constant 0 : index
    %4 = vector.load %arg3[%c0_3, %c0_4] : memref<1x128xf32, #tpu.memory_space<vmem>>, vector<1x128xf32>
    %5 = vector.broadcast %4 : vector<1x128xf32> to vector<64x128xf32>
    %6 = arith.addf %3, %5 : vector<64x128xf32>
    %cst_5 = arith.constant 0.000000e+00 : f32
    %7 = vector.broadcast %cst_5 : f32 to vector<64x128xf32>
    %8 = arith.maximumf %6, %7 : vector<64x128xf32>
    %9 = arith.truncf %8 : vector<64x128xf32> to vector<64x128xbf16>
    %c0_6 = arith.constant 0 : index
    %c0_7 = arith.constant 0 : index
    %10 = vector.load %arg4[%c0_6, %c0_7] : memref<128x128xbf16, #tpu.memory_space<vmem>>, vector<128x128xbf16>
    %cst_8 = arith.constant dense<0.000000e+00> : vector<64x128xf32>
    %11 = tpu.matmul %9, %10, %cst_8 {dimension_numbers = #tpu.dot_dimension_numbers<[1], [0], [0], [1], [0, 0, 1, 1], [], []>} : vector<64x128xbf16>, vector<128x128xbf16>, vector<64x128xf32> -> vector<64x128xf32>
    %c0_9 = arith.constant 0 : index
    %c0_10 = arith.constant 0 : index
    %12 = vector.load %arg5[%c0_9, %c0_10] : memref<1x128xf32, #tpu.memory_space<vmem>>, vector<1x128xf32>
    %13 = vector.broadcast %12 : vector<1x128xf32> to vector<64x128xf32>
    %14 = arith.addf %11, %13 : vector<64x128xf32>
    %15 = vector.shape_cast %14 : vector<64x128xf32> to vector<8x8x128xf32>
    %16 = vector.shape_cast %0 : vector<64x128xf32> to vector<8x8x128xf32>
    %cst_11 = arith.constant dense<0xFF800000> : vector<8x128xf32>
    %17 = vector.multi_reduction <maximumf>, %15, %cst_11 [1] : vector<8x8x128xf32> to vector<8x128xf32>
    %18 = vector.shape_cast %17 : vector<8x128xf32> to vector<8x1x128xf32>
    %19 = vector.broadcast %18 : vector<8x1x128xf32> to vector<8x8x128xf32>
    %20 = arith.subf %15, %19 : vector<8x8x128xf32>
    %21 = math.exp %20 : vector<8x8x128xf32>
    %cst_12 = arith.constant dense<0.000000e+00> : vector<8x128xf32>
    %22 = vector.multi_reduction <add>, %21, %cst_12 [1] : vector<8x8x128xf32> to vector<8x128xf32>
    %23 = arith.mulf %21, %16 : vector<8x8x128xf32>
    %cst_13 = arith.constant dense<0.000000e+00> : vector<8x128xf32>
    %24 = vector.multi_reduction <add>, %23, %cst_13 [1] : vector<8x8x128xf32> to vector<8x128xf32>
    %25 = arith.divf %24, %22 : vector<8x128xf32>
    %c0_14 = arith.constant 0 : index
    %c0_15 = arith.constant 0 : index
    %26 = vector.load %arg6[%c0_14, %c0_15] : memref<8x128xf32, #tpu.memory_space<vmem>>, vector<8x128xf32>
    tpu.vector_store %arg6[%c0_14, %c0_15], %25 {strides = array<i32>} : memref<8x128xf32, #tpu.memory_space<vmem>>, vector<8x128xf32>,
    %c0_16 = arith.constant 0 : index
    %c0_17 = arith.constant 0 : index
    %27 = vector.load %arg7[%c0_16, %c0_17] : memref<64x128xf32, #tpu.memory_space<vmem>>, vector<64x128xf32>
    tpu.vector_store %arg7[%c0_16, %c0_17], %8 {strides = array<i32>} : memref<64x128xf32, #tpu.memory_space<vmem>>, vector<64x128xf32>,
    return
  }
  func.func @transform_0(%arg0: i32) -> (i32, i32) {
    %c0_i32 = arith.constant 0 : i32
    %c0_i32_0 = arith.constant 0 : i32
    return %arg0, %c0_i32 : i32, i32
  }
  func.func @transform_1(%arg0: i32) -> (i32, i32) {
    %c0_i32 = arith.constant 0 : i32
    %c0_i32_0 = arith.constant 0 : i32
    %c0_i32_1 = arith.constant 0 : i32
    return %c0_i32, %c0_i32_0 : i32, i32
  }
  func.func @transform_2(%arg0: i32) -> (i32, i32) {
    %c0_i32 = arith.constant 0 : i32
    %c0_i32_0 = arith.constant 0 : i32
    %c0_i32_1 = arith.constant 0 : i32
    return %c0_i32, %c0_i32_0 : i32, i32
  }
  func.func @transform_3(%arg0: i32) -> (i32, i32) {
    %c0_i32 = arith.constant 0 : i32
    %c0_i32_0 = arith.constant 0 : i32
    %c0_i32_1 = arith.constant 0 : i32
    return %c0_i32, %c0_i32_0 : i32, i32
  }
  func.func @transform_4(%arg0: i32) -> (i32, i32) {
    %c0_i32 = arith.constant 0 : i32
    %c0_i32_0 = arith.constant 0 : i32
    %c0_i32_1 = arith.constant 0 : i32
    return %c0_i32, %c0_i32_0 : i32, i32
  }
  func.func @transform_5(%arg0: i32) -> (i32, i32) {
    %c0_i32 = arith.constant 0 : i32
    %c0_i32_0 = arith.constant 0 : i32
    return %arg0, %c0_i32 : i32, i32
  }
  func.func @transform_6(%arg0: i32) -> (i32, i32) {
    %c0_i32 = arith.constant 0 : i32
    %c0_i32_0 = arith.constant 0 : i32
    return %arg0, %c0_i32 : i32, i32
  }
}

</mosaic_0001>

<bundles_post_ra>
// kernel: tpu_custom_call.1
= control target key start
LH: loop header
LB: loop body
LE: loop exit
PB: predicated region body
PF: predicated region fallthrough
CT: control target
= control target key end

     0   :  { %12 = vsyncpa [#allocation3], 0  ;;  %s977_s0 = inlined_call_operand.hbm [shape: f32[64,128], index: 0, kind: input, shape index: {}]   ;;  %s978_s1 = inlined_call_operand.hbm [shape: bf16[128,128], index: 1, kind: input, shape index: {}]   ;;  %s979_s2 = inlined_call_operand.vmem [shape: f32[1,128], index: 2, kind: input, shape index: {}]   ;;  %s980_s3 = inlined_call_operand.hbm [shape: bf16[128,128], index: 3, kind: input, shape index: {}]   ;;  %s981_s4 = inlined_call_operand.vmem [shape: f32[1,128], index: 4, kind: input, shape index: {}]   ;;  %s982_s5 = inlined_call_operand.hbm [shape: f32[8,128], index: 5, kind: output, shape index: {0}]   ;;  %s983_s6 = inlined_call_operand.hbm [shape: f32[64,128], index: 6, kind: output, shape index: {1}]  }
   0x1   :  { %13 = vsyncpa [#allocation6], 0 }
   0x2   :  { %14 = vsyncpa [#allocation4], 0 }
   0x3   :  { %15 = vsyncpa [#allocation10], 0  ;;  %s873_s21 = smov [#allocation5]  }
   0x4   :  { %s33_s22 = sshll.u32 %s873_s21, 4  ;;  %s34_s22 = int_to_ptr.vmem [resolvable:$true] %s33_s22 }
   0x5   :  { %s773_s23 = scalar_lea.vmem %s34_s22, 1024  ;;  %p778_p1 = scmp.lt.s32.totalorder %s34_s22, %s34_s22 }
   0x6   :  { %p774_p0 = scmp.ne.s32.totalorder %s34_s22, %s773_s23  ;;  %p779_p2 = scmp.lt.s32.totalorder %s773_s23, %s773_s23 }
   0x8   :  { %p780_p3 = por %p779_p2, %p778_p1 }
   0xa   :  { %p781_p4 = pnand %p780_p3, %p774_p0 }
   0xc   :  { %784 = shalt.err (!%p781_p4)
}
   0xd   :  { %s874_s24 = smov 64   ;;  %s875_s25 = smov 4  }
   0xe   :  { %39 = dma.hbm_to_vmem [thread:$0]  %s978_s1, 1024, %s34_s22, [#allocation6], %s874_s24, %s874_s24, %s875_s25  }
   0xf   :  { %s876_s28 = smov [#allocation2]  }
  0x10   :  { %s21_s29 = sshll.u32 %s876_s28, 4  ;;  %s22_s29 = int_to_ptr.vmem [resolvable:$true] %s21_s29 }
  0x11   :  { %s793_s30 = scalar_lea.vmem %s22_s29, 1024  ;;  %p798_p6 = scmp.lt.s32.totalorder %s22_s29, %s22_s29 }
  0x12   :  { %p794_p5 = scmp.ne.s32.totalorder %s22_s29, %s793_s30  ;;  %p799_p7 = scmp.lt.s32.totalorder %s793_s30, %s793_s30 }
  0x14   :  { %p800_p8 = por %p799_p7, %p798_p6 }
  0x16   :  { %p801_p9 = pnand %p800_p8, %p794_p5 }
  0x18   :  { %804 = shalt.err (!%p801_p9)
}
  0x19   :  { %s877_s7 = smov 128   ;;  %s878_s8 = smov 8  }
  0x1a   :  { %27 = dma.hbm_to_vmem [thread:$0]  %s977_s0, 1024, %s22_s29, [#allocation3], %s877_s7, %s877_s7, %s878_s8  }
  0x1b   :  { %s879_s1 = smov [#allocation7]  }
  0x1c   :  { %s47_s11 = sshll.u32 %s879_s1, 4  ;;  %s48_s11 = int_to_ptr.vmem [resolvable:$true] %s47_s11 }
  0x1d   :  { %s813_s12 = scalar_lea.vmem %s48_s11, 1024  ;;  %p818_p11 = scmp.lt.s32.totalorder %s48_s11, %s48_s11 }
  0x1e   :  { %p814_p10 = scmp.ne.s32.totalorder %s48_s11, %s813_s12  ;;  %p819_p12 = scmp.lt.s32.totalorder %s813_s12, %s813_s12 }
  0x20   :  { %p820_p13 = por %p819_p12, %p818_p11 }
  0x22   :  { %p821_p0 = pnand %p820_p13, %p814_p10 }
  0x24   :  { %824 = shalt.err (!%p821_p0)
}
  0x25   :  { %53 = dma.hbm_to_vmem [thread:$0]  %s980_s3, 1024, %s48_s11, [#allocation6], %s874_s24, %s874_s24, %s875_s25  }
  0x26   :  { %865 = dma.done.wait [#allocation3], 1024  }
  0x27   :  { %866 = vsyncadd [#allocation3], 4294966272 }
  0x28   :  { %867 = dma.done.wait [#allocation6], 2048  }
  0x29   :  { %868 = vsyncadd [#allocation6], 4294965248  ;;  %v717_v0 = vld [vmem:[#allocation5 + $0x38] sm:$0xff]   ;;  %v718_v1 = vld [vmem:[#allocation5 + $0x30] sm:$0xff]  }
  0x2a   :  { %660 = vmatprep.subr.bf16.mxu0 %v717_v0  ;;  %v719_v2 = vld [vmem:[#allocation5 + $0x28] sm:$0xff]   ;;  %v720_v3 = vld [vmem:[#allocation5 + $0x20] sm:$0xff]   ;;  %v721_v7 = vld [vmem:[#allocation5 + $0x18] sm:$0xff]  }
  0x2b   :  { %661 = vmatpush3.bf16.msra.mxu0 %v717_v0  ;;  %v929_v4 = vld [vmem:[#allocation2] sm:$0xff]  ;;  %v931_v5 = vld [vmem:[#allocation2 + $0x8] sm:$0xff]  ;;  %v725_v8 = vld [vmem:[#allocation7 + $0x38] sm:$0xff]  }
  0x2c   :  { %662 = vmatprep.subr.bf16.mxu0 %v718_v1  ;;  %v74_v6 = vpack.c.bf16 %v931_v5, %v929_v4  ;;  %v726_v9 = vld [vmem:[#allocation7 + $0x30] sm:$0xff]   ;;  %684 = vmatprep.subr.bf16.mxu1 %v725_v8  ;;  %v727_v11 = vld [vmem:[#allocation7 + $0x28] sm:$0xff]   ;;  %v728_v12 = vld [vmem:[#allocation7 + $0x20] sm:$0xff]  }
  0x2d   :  { %v722_v10 = vld [vmem:[#allocation5 + $0x10] sm:$0xff]   ;;  %685 = vmatpush3.bf16.msra.mxu1 %v725_v8  ;;  %v723_v13 = vld [vmem:[#allocation5 + $0x8] sm:$0xff]   ;;  %v729_v14 = vld [vmem:[#allocation7 + $0x18] sm:$0xff]  }
  0x2e   :  { %676 = vmatprep.mubr.bf16.mxu0 %v74_v6  ;;  %686 = vmatprep.subr.bf16.mxu1 %v726_v9  ;;  %v724_v15 = vld [vmem:[#allocation5] sm:$0xff]   ;;  %v935_v16 = vld [vmem:[#allocation2 + $0x10] sm:$0xff]  ;;  %v937_v17 = vld [vmem:[#allocation2 + $0x18] sm:$0xff] }
  0x2f   :  { %663 = vmatpush3.bf16.msra.mxu0 %v718_v1  ;;  %v939_v18 = vld [vmem:[#allocation2 + $0x20] sm:$0xff]  ;;  %v941_v19 = vld [vmem:[#allocation2 + $0x28] sm:$0xff]  ;;  %v75_v20 = vpack.c.bf16 %v937_v17, %v935_v16  ;;  %v947_v22 = vld [vmem:[#allocation2 + $0x30] sm:$0xff] }
  0x30   :  { %664 = vmatprep.subr.bf16.mxu0 %v719_v2  ;;  %v76_v21 = vpack.c.bf16 %v941_v19, %v939_v18  ;;  %v949_v23 = vld [vmem:[#allocation2 + $0x38] sm:$0xff]  ;;  %v730_v25 = vld [vmem:[#allocation7 + $0x10] sm:$0xff]   ;;  %v731_v26 = vld [vmem:[#allocation7 + $0x8] sm:$0xff]  }
  0x31   :  { %687 = vmatpush3.bf16.msra.mxu1 %v726_v9  ;;  %v77_v24 = vpack.c.bf16 %v949_v23, %v947_v22  ;;  %v732_v27 = vld [vmem:[#allocation7] sm:$0xff]  }
  0x32   :  { %688 = vmatprep.subr.bf16.mxu1 %v727_v11  ;;  %v618_v28 = vld [vmem:[%s979_s2] ss:$0 sm:$0xff]  ;;  %s880_s2 = smov [#allocation9]  }
  0x33   :  { %665 = vmatpush3.bf16.msra.mxu0 %v719_v2  ;;  %s601_s15 = sshll.u32 %s880_s2, 4  ;;  %s602_s15 = int_to_ptr.vmem [resolvable:$true] %s601_s15 }
  0x34   :  { %666 = vmatprep.subr.bf16.mxu0 %v720_v3  ;;  %s825_s16 = scalar_lea.vmem %s602_s15, 1024  ;;  %p830_p2 = scmp.lt.s32.totalorder %s602_s15, %s602_s15 }
  0x35   :  { %689 = vmatpush3.bf16.msra.mxu1 %v727_v11  ;;  %p826_p1 = scmp.ne.s32.totalorder %s602_s15, %s825_s16  ;;  %p831_p3 = scmp.lt.s32.totalorder %s825_s16, %s825_s16 }
  0x36   :  { %690 = vmatprep.subr.bf16.mxu1 %v728_v12 }
  0x37   :  { %667 = vmatpush3.bf16.msra.mxu0 %v720_v3  ;;  %p832_p4 = por %p831_p3, %p830_p2 }
  0x38   :  { %668 = vmatprep.subr.bf16.mxu0 %v721_v7 }
  0x39   :  { %691 = vmatpush3.bf16.msra.mxu1 %v728_v12  ;;  %p833_p5 = pnand %p832_p4, %p826_p1 }
  0x3a   :  { %692 = vmatprep.subr.bf16.mxu1 %v729_v14 }
  0x3b   :  { %669 = vmatpush3.bf16.msra.mxu0 %v721_v7 }
  0x3c   :  { %670 = vmatprep.subr.bf16.mxu0 %v722_v10 }
  0x3d   :  { %693 = vmatpush3.bf16.msra.mxu1 %v729_v14 }
  0x3e   :  { %694 = vmatprep.subr.bf16.mxu1 %v730_v25 }
  0x3f   :  { %671 = vmatpush3.bf16.msra.mxu0 %v722_v10 }
  0x40   :  { %672 = vmatprep.subr.bf16.mxu0 %v723_v13 }
  0x41   :  { %695 = vmatpush3.bf16.msra.mxu1 %v730_v25 }
  0x42   :  { %696 = vmatprep.subr.bf16.mxu1 %v731_v26 }
  0x43   :  { %673 = vmatpush3.bf16.msra.mxu0 %v723_v13 }
  0x44   :  { %674 = vmatprep.subr.bf16.mxu0 %v724_v15 }
  0x45   :  { %697 = vmatpush3.bf16.msra.mxu1 %v731_v26 }
  0x46   :  { %698 = vmatprep.subr.bf16.mxu1 %v732_v27 }
  0x47   :  { %675 = vmatpush3.bf16.msra.mxu0 %v724_v15 }
  0x49   :  { %699 = vmatpush3.bf16.msra.mxu1 %v732_v27 }
  0x4a   :  { %677 = vmatmul.mubr.bf16.vlgmr.msra.gmra.mxu0 %v75_v20 }
  0x4b   :  { %680 = vmatprep.mubr.bf16.mxu0 %v76_v21 }
  0x52   :  { %681 = vmatmul.mubr.bf16.gmra.mxu0 %v77_v24 }
 0x10a   :  { %v678_v29 = vpop.f32.mrf.mxu0 }
 0x10b   :  { %v192_v30 = vadd.f32 %v678_v29, %v618_v28 }
 0x10c   :  { %v183_v31 = vpop.f32.mrf.mxu0 }
 0x10d   :  { %v216_v32 = vmax.f32 %v192_v30, 0.0  ;;  %v184_v33 = vadd.f32 %v618_v28, %v183_v31 }
 0x10e   :  { %v679_v34 = vpop.f32.mrf.mxu0 }
 0x10f   :  { %580 = vst [vmem:[#allocation9 + $0x10] sm:$0xff] %v216_v32  ;;  %v214_v35 = vmax.f32 %v184_v33, 0.0  ;;  %v195_v36 = vadd.f32 %v679_v34, %v618_v28 }
 0x110   :  { %v186_v37 = vpop.f32.mrf.mxu0 }
 0x111   :  { %578 = vst [vmem:[#allocation9] sm:$0xff] %v214_v35  ;;  %v217_v38 = vmax.f32 %v195_v36, 0.0  ;;  %v187_v39 = vadd.f32 %v618_v28, %v186_v37 }
 0x112   :  { %v682_v40 = vpop.f32.mrf.mxu0 }
 0x113   :  { %581 = vst [vmem:[#allocation9 + $0x18] sm:$0xff] %v217_v38  ;;  %v215_v41 = vmax.f32 %v187_v39, 0.0  ;;  %v208_v42 = vadd.f32 %v682_v40, %v618_v28  ;;  %v223_v47 = vpack.c.bf16 %v217_v38, %v216_v32 }
 0x114   :  { %v199_v43 = vpop.f32.mrf.mxu0 }
 0x115   :  { %579 = vst [vmem:[#allocation9 + $0x8] sm:$0xff] %v215_v41  ;;  %v220_v44 = vmax.f32 %v208_v42, 0.0  ;;  %v200_v45 = vadd.f32 %v618_v28, %v199_v43  ;;  %v222_v46 = vpack.c.bf16 %v215_v41, %v214_v35 }
 0x116   :  { %v683_v48 = vpop.f32.mrf.mxu0 }
 0x117   :  { %584 = vst [vmem:[#allocation9 + $0x30] sm:$0xff] %v220_v44  ;;  %v218_v49 = vmax.f32 %v200_v45, 0.0  ;;  %v211_v50 = vadd.f32 %v683_v48, %v618_v28  ;;  %700 = vmatprep.mubr.bf16.mxu1 %v222_v46 }
 0x118   :  { %v202_v51 = vpop.f32.mrf.mxu0  ;;  %701 = vmatmul.mubr.bf16.vlgmr.msra.gmra.mxu1 %v223_v47 }
 0x119   :  { %582 = vst [vmem:[#allocation9 + $0x20] sm:$0xff] %v218_v49  ;;  %v221_v52 = vmax.f32 %v211_v50, 0.0  ;;  %v203_v53 = vadd.f32 %v618_v28, %v202_v51 }
 0x11b   :  { %585 = vst [vmem:[#allocation9 + $0x38] sm:$0xff] %v221_v52  ;;  %v219_v54 = vmax.f32 %v203_v53, 0.0  ;;  %v225_v56 = vpack.c.bf16 %v221_v52, %v220_v44 }
 0x11d   :  { %v224_v55 = vpack.c.bf16 %v219_v54, %v218_v49  ;;  %583 = vst [vmem:[#allocation9 + $0x28] sm:$0xff] %v219_v54 }
 0x11f   :  { %704 = vmatprep.mubr.bf16.mxu1 %v224_v55 }
 0x120   :  { %705 = vmatmul.mubr.bf16.gmra.mxu1 %v225_v56 }
 0x121   :  { %836 = shalt.err (!%p833_p5)
}
 0x122   :  { %607 = dma.vmem_to_hbm [thread:$0]  %s602_s15, 1024, %s983_s6, [#allocation10], %s877_s7, %s877_s7, %s878_s8   ;;  %vm562_vm0 = vcmask 1041409   ;;  %vm564_vm1 = vcmask 1042434   ;;  %vm566_vm2 = vcmask 1043459   ;;  %vm568_vm3 = vcmask 1044484  }
 0x123   :  { %v627_v57 = vld [vmem:[%s981_s4] ss:$0 sm:$0xff]  ;;  %vm570_vm4 = vcmask 1045509   ;;  %vm572_vm5 = vcmask 1046534   ;;  %s881_s4 = smov [#allocation8]   ;;  %vm574_vm6 = vcmask 1047559  }
 0x124   :  { %s592_s6 = sshll.u32 %s881_s4, 4  ;;  %s593_s6 = int_to_ptr.vmem [resolvable:$true] %s592_s6 }
 0x125   :  { %s845_s21 = scalar_lea.vmem %s593_s6, 128  ;;  %p850_p7 = scmp.lt.s32.totalorder %s593_s6, %s593_s6 }
 0x126   :  { %p846_p6 = scmp.ne.s32.totalorder %s593_s6, %s845_s21  ;;  %p851_p8 = scmp.lt.s32.totalorder %s845_s21, %s845_s21 }
 0x128   :  { %p852_p9 = por %p851_p8, %p850_p7 }
 0x12a   :  { %p853_p10 = pnand %p852_p9, %p846_p6 }
 0x1d8   :  { %v702_v58 = vpop.f32.mrf.mxu1 }
 0x1d9   :  { %v340_v59 = vadd.f32 %v702_v58, %v627_v57 }
 0x1da   :  { %v331_v60 = vpop.f32.mrf.mxu1 }
 0x1db   :  { %v374_v61 = vrot.slane %v340_v59, 4  ;;  %v332_v62 = vadd.f32 %v627_v57, %v331_v60 }
 0x1dc   :  { %v703_v63 = vpop.f32.mrf.mxu1 }
 0x1dd   :  { %v375_v0 = vmax.f32 %v340_v59, %v374_v61  ;;  %v362_v1 = vrot.slane %v332_v62, 4  ;;  %v343_v2 = vadd.f32 %v703_v63, %v627_v57 }
 0x1de   :  { %v334_v3 = vpop.f32.mrf.mxu1 }
 0x1df   :  { %v376_v6 = vrot.slane %v375_v0, 2  ;;  %v363_v7 = vmax.f32 %v332_v62, %v362_v1  ;;  %v380_v8 = vrot.slane %v343_v2, 4  ;;  %v335_v9 = vadd.f32 %v627_v57, %v334_v3 }
 0x1e0   :  { %v706_v10 = vpop.f32.mrf.mxu1 }
 0x1e1   :  { %v377_v11 = vmax.f32 %v375_v0, %v376_v6  ;;  %v364_v12 = vrot.slane %v363_v7, 2  ;;  %v381_v13 = vmax.f32 %v343_v2, %v380_v8  ;;  %v368_v14 = vrot.slane %v335_v9, 4 }
 0x1e2   :  { %v356_v15 = vadd.f32 %v706_v10, %v627_v57  ;;  %v347_v20 = vpop.f32.mrf.mxu1 }
 0x1e3   :  { %v378_v21 = vrot.slane %v377_v11, 1  ;;  %v365_v24 = vmax.f32 %v363_v7, %v364_v12  ;;  %v382_v25 = vrot.slane %v381_v13, 2  ;;  %v369_v26 = vmax.f32 %v335_v9, %v368_v14 }
 0x1e4   :  { %v398_v27 = vrot.slane %v356_v15, 4  ;;  %v348_v28 = vadd.f32 %v627_v57, %v347_v20  ;;  %v707_v29 = vpop.f32.mrf.mxu1 }
 0x1e5   :  { %v379_v30 = vmax.f32 %v377_v11, %v378_v21  ;;  %v366_v31 = vrot.slane %v365_v24, 1  ;;  %v383_v32 = vmax.f32 %v381_v13, %v382_v25  ;;  %v370_v33 = vrot.slane %v369_v26, 2 }
 0x1e6   :  { %v399_v34 = vmax.f32 %v356_v15, %v398_v27  ;;  %v386_v35 = vrot.slane %v348_v28, 4  ;;  %v359_v36 = vadd.f32 %v707_v29, %v627_v57  ;;  %v350_v37 = vpop.f32.mrf.mxu1 }
 0x1e7   :  { %v412_v38 = vsub.f32 %v340_v59, %v379_v30  ;;  %v367_v39 = vmax.f32 %v365_v24, %v366_v31  ;;  %v384_v40 = vrot.slane %v383_v32, 1  ;;  %v371_v41 = vmax.f32 %v369_v26, %v370_v33 }
 0x1e8   :  { %v400_v42 = vrot.slane %v399_v34, 2  ;;  %v387_v43 = vmax.f32 %v348_v28, %v386_v35  ;;  %v404_v44 = vrot.slane %v359_v36, 4  ;;  %v351_v45 = vadd.f32 %v627_v57, %v350_v37 }
 0x1e9   :  { %v422_v46 = vmul.f32 1.442695, %v412_v38  ;;  %v410_v47 = vsub.f32 %v332_v62, %v367_v39  ;;  %v385_v48 = vmax.f32 %v383_v32, %v384_v40  ;;  %v372_v49 = vrot.slane %v371_v41, 1 }
 0x1ea   :  { %v401_v50 = vmax.f32 %v399_v34, %v400_v42  ;;  %v388_v51 = vrot.slane %v387_v43, 2  ;;  %v405_v52 = vmax.f32 %v359_v36, %v404_v44  ;;  %v392_v53 = vrot.slane %v351_v45, 4 }
 0x1eb   :  { %733 = vpow2.f32 %v422_v46  ;;  %v418_v54 = vmul.f32 1.442695, %v410_v47  ;;  %v413_v55 = vsub.f32 %v343_v2, %v385_v48  ;;  %v373_v56 = vmax.f32 %v371_v41, %v372_v49 }
 0x1ec   :  { %v402_v58 = vrot.slane %v401_v50, 1  ;;  %v389_v59 = vmax.f32 %v387_v43, %v388_v51  ;;  %v406_v60 = vrot.slane %v405_v52, 2  ;;  %v393_v61 = vmax.f32 %v351_v45, %v392_v53 }
 0x1ed   :  { %735 = vpow2.f32 %v418_v54  ;;  %v424_v63 = vmul.f32 1.442695, %v413_v55  ;;  %v411_v0 = vsub.f32 %v335_v9, %v373_v56 }
 0x1ee   :  { %v403_v57 = vmax.f32 %v401_v50, %v402_v58  ;;  %v390_v1 = vrot.slane %v389_v59, 1  ;;  %v407_v62 = vmax.f32 %v405_v52, %v406_v60  ;;  %v394_v3 = vrot.slane %v393_v61, 2 }
 0x1ef   :  { %737 = vpow2.f32 %v424_v63  ;;  %v420_v6 = vmul.f32 1.442695, %v411_v0 }
 0x1f0   :  { %v416_v7 = vsub.f32 %v356_v15, %v403_v57  ;;  %v391_v8 = vmax.f32 %v389_v59, %v390_v1  ;;  %v408_v10 = vrot.slane %v407_v62, 1  ;;  %v395_v11 = vmax.f32 %v393_v61, %v394_v3 }
 0x1f1   :  { %739 = vpow2.f32 %v420_v6 }
 0x1f2   :  { %v430_v2 = vmul.f32 1.442695, %v416_v7  ;;  %v414_v12 = vsub.f32 %v348_v28, %v391_v8  ;;  %v409_v13 = vmax.f32 %v407_v62, %v408_v10  ;;  %v396_v14 = vrot.slane %v395_v11, 1 }
 0x1f4   :  { %741 = vpow2.f32 %v430_v2  ;;  %v426_v20 = vmul.f32 1.442695, %v414_v12  ;;  %v417_v21 = vsub.f32 %v359_v36, %v409_v13  ;;  %v397_v24 = vmax.f32 %v395_v11, %v396_v14 }
 0x1f6   :  { %743 = vpow2.f32 %v426_v20  ;;  %v432_v9 = vmul.f32 1.442695, %v417_v21  ;;  %v415_v25 = vsub.f32 %v351_v45, %v397_v24 }
 0x1f8   :  { %v734_v26 = vpop.eup %733  ;;  %745 = vpow2.f32 %v432_v9  ;;  %v428_v27 = vmul.f32 1.442695, %v415_v25 }
 0x1f9   :  { %v446_v15 = vrot.slane %v734_v26, 4  ;;  %v484_v36 = vmul.f32 %v734_v26, %v935_v16 }
 0x1fa   :  { %v736_v29 = vpop.eup %735  ;;  %747 = vpow2.f32 %v428_v27 }
 0x1fb   :  { %v434_v30 = vrot.slane %v736_v29, 4  ;;  %v447_v35 = vadd.f32 %v734_v26, %v446_v15  ;;  %v482_v46 = vmul.f32 %v736_v29, %v929_v4  ;;  %v502_v49 = vrot.slane %v484_v36, 4 }
 0x1fc   :  { %v738_v31 = vpop.eup %737 }
 0x1fd   :  { %v435_v32 = vadd.f32 %v736_v29, %v434_v30  ;;  %v452_v33 = vrot.slane %v738_v31, 4  ;;  %v448_v44 = vrot.slane %v447_v35, 2  ;;  %v485_v55 = vmul.f32 %v738_v31, %v937_v17 }
 0x1fe   :  { %v740_v28 = vpop.eup %739  ;;  %v490_v61 = vrot.slane %v482_v46, 4  ;;  %v503_v57 = vadd.f32 %v502_v49, %v484_v36 }
 0x1ff   :  { %v440_v34 = vrot.slane %v740_v28, 4  ;;  %v453_v37 = vadd.f32 %v738_v31, %v452_v33  ;;  %v436_v40 = vrot.slane %v435_v32, 2  ;;  %v483_v53 = vmul.f32 %v740_v28, %v931_v5 }
 0x200   :  { %v449_v58 = vadd.f32 %v448_v44, %v447_v35  ;;  %v508_v21 = vrot.slane %v485_v55, 4  ;;  %v491_v25 = vadd.f32 %v490_v61, %v482_v46 }
 0x201   :  { %v742_v38 = vpop.eup %741  ;;  %v441_v39 = vadd.f32 %v740_v28, %v440_v34  ;;  %v454_v45 = vrot.slane %v453_v37, 2  ;;  %v437_v51 = vadd.f32 %v436_v40, %v435_v32  ;;  %v496_v6 = vrot.slane %v483_v53, 4 }
 0x202   :  { %v470_v41 = vrot.slane %v742_v38, 4  ;;  %v450_v17 = vrot.slane %v449_v58, 1  ;;  %v488_v12 = vmul.f32 %v742_v38, %v947_v22  ;;  %v509_v22 = vadd.f32 %v508_v21, %v485_v55 }
 0x203   :  { %v744_v42 = vpop.eup %743  ;;  %v442_v43 = vrot.slane %v441_v39, 2  ;;  %v455_v59 = vadd.f32 %v454_v45, %v453_v37  ;;  %v438_v1 = vrot.slane %v437_v51, 1  ;;  %v497_v29 = vadd.f32 %v496_v6, %v483_v53 }
 0x204   :  { %v458_v47 = vrot.slane %v744_v42, 4  ;;  %v471_v48 = vadd.f32 %v742_v38, %v470_v41  ;;  %v486_v3 = vmul.f32 %v744_v42, %v939_v18  ;;  %v451_v30 = vadd.f32 %v450_v17, %v449_v58 }
 0x205   :  { %v746_v50 = vpop.eup %745  ;;  %v443_v52 = vadd.f32 %v442_v43, %v441_v39  ;;  %v456_v11 = vrot.slane %v455_v59, 1  ;;  %v439_v24 = vadd.f32 %v438_v1, %v437_v51  ;;  %v526_v32 = vrot.slane %v488_v12, 4 }
 0x206   :  { %v459_v54 = vadd.f32 %v744_v42, %v458_v47  ;;  %v476_v16 = vrot.slane %v746_v50, 4  ;;  %v472_v60 = vrot.slane %v471_v48, 2  ;;  %v489_v20 = vmul.f32 %v746_v50, %v949_v23 }
 0x207   :  { %v748_v56 = vpop.eup %747  ;;  %v444_v62 = vrot.slane %v443_v52, 1  ;;  %v514_v18 = vrot.slane %v486_v3, 4  ;;  %v492_v37 = vrot.slane %v491_v25, 2  ;;  %749 = vrcp.f32 %v439_v24 }
 0x208   :  { %v460_v63 = vrot.slane %v459_v54, 2  ;;  %v464_v0 = vrot.slane %v748_v56, 4  ;;  %v477_v4 = vadd.f32 %v746_v50, %v476_v16  ;;  %v487_v10 = vmul.f32 %v748_v56, %v941_v19 }
 0x209   :  { %v473_v2 = vadd.f32 %v472_v60, %v471_v48  ;;  %v445_v26 = vadd.f32 %v444_v62, %v443_v52  ;;  %v457_v19 = vadd.f32 %v456_v11, %v455_v59  ;;  %v532_v34 = vrot.slane %v489_v20, 4 }
 0x20a   :  { %v461_v7 = vadd.f32 %v460_v63, %v459_v54  ;;  %v465_v5 = vadd.f32 %v748_v56, %v464_v0  ;;  %v478_v8 = vrot.slane %v477_v4, 2  ;;  %v520_v15 = vrot.slane %v487_v10, 4 }
 0x20b   :  { %v474_v31 = vrot.slane %v473_v2, 1  ;;  %v515_v23 = vadd.f32 %v514_v18, %v486_v3  ;;  %v498_v38 = vrot.slane %v497_v29, 2  ;;  %751 = vrcp.f32 %v445_v26 }
 0x20c   :  { %v466_v13 = vrot.slane %v465_v5, 2  ;;  %v479_v14 = vadd.f32 %v478_v8, %v477_v4  ;;  %v462_v9 = vrot.slane %v461_v7, 1  ;;  %v521_v39 = vadd.f32 %v520_v15, %v487_v10 }
 0x20d   :  { %v475_v40 = vadd.f32 %v474_v31, %v473_v2  ;;  %v504_v41 = vrot.slane %v503_v57, 2  ;;  %v527_v42 = vadd.f32 %v526_v32, %v488_v12  ;;  %753 = vrcp.f32 %v451_v30 }
 0x20e   :  { %v467_v27 = vadd.f32 %v466_v13, %v465_v5  ;;  %v480_v28 = vrot.slane %v479_v14, 1  ;;  %v463_v35 = vadd.f32 %v462_v9, %v461_v7  ;;  %v510_v44 = vrot.slane %v509_v22, 2 }
 0x20f   :  { %v533_v45 = vadd.f32 %v532_v34, %v489_v20  ;;  %755 = vrcp.f32 %v457_v19  ;;  %v516_v46 = vrot.slane %v515_v23, 2  ;;  %v493_v47 = vadd.f32 %v492_v37, %v491_v25 }
 0x210   :  { %v468_v33 = vrot.slane %v467_v27, 1  ;;  %v481_v43 = vadd.f32 %v480_v28, %v479_v14  ;;  %757 = vrcp.f32 %v463_v35  ;;  %v499_v48 = vadd.f32 %v498_v38, %v497_v29 }
 0x211   :  { %v522_v49 = vrot.slane %v521_v39, 2  ;;  %v505_v50 = vadd.f32 %v504_v41, %v503_v57  ;;  %v528_v51 = vrot.slane %v527_v42, 2  ;;  %v511_v52 = vadd.f32 %v510_v44, %v509_v22 }
 0x212   :  { %v469_v36 = vadd.f32 %v468_v33, %v467_v27  ;;  %v534_v53 = vrot.slane %v533_v45, 2  ;;  %v517_v54 = vadd.f32 %v516_v46, %v515_v23  ;;  %v494_v16 = vrot.slane %v493_v47, 1 }
 0x213   :  { %v500_v55 = vrot.slane %v499_v48, 1  ;;  %v523_v56 = vadd.f32 %v522_v49, %v521_v39  ;;  %v506_v58 = vrot.slane %v505_v50, 1  ;;  %v529_v59 = vadd.f32 %v528_v51, %v527_v42 }
 0x214   :  { %759 = vrcp.f32 %v469_v36  ;;  %v512_v60 = vrot.slane %v511_v52, 1  ;;  %v535_v61 = vadd.f32 %v534_v53, %v533_v45  ;;  %v518_v63 = vrot.slane %v517_v54, 1  ;;  %v750_v0 = vpop.eup %749 }
 0x215   :  { %761 = vrcp.f32 %v475_v40  ;;  %v495_v4 = vadd.f32 %v494_v16, %v493_v47  ;;  %v501_v1 = vadd.f32 %v500_v55, %v499_v48  ;;  %v524_v62 = vrot.slane %v523_v56, 1 }
 0x216   :  { %763 = vrcp.f32 %v481_v43  ;;  %v507_v57 = vadd.f32 %v506_v58, %v505_v50  ;;  %v530_v6 = vrot.slane %v529_v59, 1  ;;  %v513_v5 = vadd.f32 %v512_v60, %v511_v52 }
 0x217   :  { %v536_v8 = vrot.slane %v535_v61, 1  ;;  %v539_v10 = vmul.f32 %v750_v0, %v495_v4  ;;  %v519_v2 = vadd.f32 %v518_v63, %v517_v54  ;;  %v525_v14 = vadd.f32 %v524_v62, %v523_v56 }
 0x218   :  { %v752_v3 = vpop.eup %751  ;;  %v531_v9 = vadd.f32 %v530_v6, %v529_v59 }
 0x219   :  { %v541_v17 = vmul.f32 %v752_v3, %v501_v1  ;;  %v537_v27 = vadd.f32 %v536_v8, %v535_v61 }
 0x21a   :  { %v754_v7 = vpop.eup %753 }
 0x21b   :  { %v543_v12 = vmul.f32 %v754_v7, %v507_v57  ;;  %v563_v21 = vsel %vm562_vm0, %v541_v17, %v539_v10 }
 0x21c   :  { %v756_v11 = vpop.eup %755 }
 0x21d   :  { %v758_v13 = vpop.eup %757  ;;  %v545_v20 = vmul.f32 %v756_v11, %v513_v5  ;;  %v565_v18 = vsel %vm564_vm1, %v543_v12, %v563_v21 }
 0x21e   :  { %v547_v25 = vmul.f32 %v758_v13, %v519_v2 }
 0x21f   :  { %v567_v15 = vsel %vm566_vm2, %v545_v20, %v565_v18 }
 0x220   :  { %v569_v31 = vsel %vm568_vm3, %v547_v25, %v567_v15 }
 0x221   :  { %v760_v24 = vpop.eup %759 }
 0x222   :  { %v762_v26 = vpop.eup %761  ;;  %v549_v29 = vmul.f32 %v760_v24, %v525_v14 }
 0x223   :  { %v764_v30 = vpop.eup %763  ;;  %v551_v19 = vmul.f32 %v762_v26, %v531_v9 }
 0x224   :  { %v553_v32 = vmul.f32 %v764_v30, %v537_v27  ;;  %v571_v33 = vsel %vm570_vm4, %v549_v29, %v569_v31 }
 0x225   :  { %v573_v28 = vsel %vm572_vm5, %v551_v19, %v571_v33 }
 0x226   :  { %v575_v22 = vsel %vm574_vm6, %v553_v32, %v573_v28 }
 0x227   :  { %577 = vst [vmem:[#allocation8] sm:$0xff] %v575_v22 }
 0x228   :  { %856 = shalt.err (!%p853_p10)
}
 0x229   :  { %595 = dma.vmem_to_hbm [thread:$0]  %s593_s6, 128, %s982_s5, [#allocation4]  }
 0x22a   :  { %869 = dma.done.wait [#allocation4], 128  }
 0x22b   :  { %870 = vsyncadd [#allocation4], 4294967168 }
 0x22c   :  { %871 = dma.done.wait [#allocation10], 1024  }
 0x22d   :  { %872 = vsyncadd [#allocation10], 4294966272 }
 0x22e   :  { %614 = vsyncpa [#allocation3], 1 }
 0x22f   :  { %615 = vsyncpa [#allocation6], 1 }
 0x230   :  { %616 = vsyncpa [#allocation4], 1 }
 0x231   :  { %617 = vsyncpa [#allocation10], 1 }

// kernel: tpu_custom_call.1
= control target key start
LH: loop header
LB: loop body
LE: loop exit
PB: predicated region body
PF: predicated region fallthrough
CT: control target
= control target key end

     0   :  { %12 = vsyncpa [#allocation3], 0  ;;  %s977_s0 = inlined_call_operand.hbm [shape: f32[64,128], index: 0, kind: input, shape index: {}]   ;;  %s978_s1 = inlined_call_operand.hbm [shape: bf16[128,128], index: 1, kind: input, shape index: {}]   ;;  %s979_s2 = inlined_call_operand.vmem [shape: f32[1,128], index: 2, kind: input, shape index: {}]   ;;  %s980_s3 = inlined_call_operand.hbm [shape: bf16[128,128], index: 3, kind: input, shape index: {}]   ;;  %s981_s4 = inlined_call_operand.vmem [shape: f32[1,128], index: 4, kind: input, shape index: {}]   ;;  %s982_s5 = inlined_call_operand.hbm [shape: f32[8,128], index: 5, kind: output, shape index: {0}]   ;;  %s983_s6 = inlined_call_operand.hbm [shape: f32[64,128], index: 6, kind: output, shape index: {1}]  }
   0x1   :  { %13 = vsyncpa [#allocation6], 0 }
   0x2   :  { %14 = vsyncpa [#allocation4], 0 }
   0x3   :  { %15 = vsyncpa [#allocation10], 0  ;;  %s873_s21 = smov [#allocation5]  }
   0x4   :  { %s33_s22 = sshll.u32 %s873_s21, 4  ;;  %s34_s22 = int_to_ptr.vmem [resolvable:$true] %s33_s22 }
   0x5   :  { %s773_s23 = scalar_lea.vmem %s34_s22, 1024  ;;  %p778_p1 = scmp.lt.s32.totalorder %s34_s22, %s34_s22 }
   0x6   :  { %p774_p0 = scmp.ne.s32.totalorder %s34_s22, %s773_s23  ;;  %p779_p2 = scmp.lt.s32.totalorder %s773_s23, %s773_s23 }
   0x8   :  { %p780_p3 = por %p779_p2, %p778_p1 }
   0xa   :  { %p781_p4 = pnand %p780_p3, %p774_p0 }
   0xc   :  { %784 = shalt.err (!%p781_p4)
}
   0xd   :  { %s874_s24 = smov 64   ;;  %s875_s25 = smov 4  }
   0xe   :  { %39 = dma.hbm_to_vmem [thread:$0]  %s978_s1, 1024, %s34_s22, [#allocation6], %s874_s24, %s874_s24, %s875_s25  }
   0xf   :  { %s876_s28 = smov [#allocation2]  }
  0x10   :  { %s21_s29 = sshll.u32 %s876_s28, 4  ;;  %s22_s29 = int_to_ptr.vmem [resolvable:$true] %s21_s29 }
  0x11   :  { %s793_s30 = scalar_lea.vmem %s22_s29, 1024  ;;  %p798_p6 = scmp.lt.s32.totalorder %s22_s29, %s22_s29 }
  0x12   :  { %p794_p5 = scmp.ne.s32.totalorder %s22_s29, %s793_s30  ;;  %p799_p7 = scmp.lt.s32.totalorder %s793_s30, %s793_s30 }
  0x14   :  { %p800_p8 = por %p799_p7, %p798_p6 }
  0x16   :  { %p801_p9 = pnand %p800_p8, %p794_p5 }
  0x18   :  { %804 = shalt.err (!%p801_p9)
}
  0x19   :  { %s877_s7 = smov 128   ;;  %s878_s8 = smov 8  }
  0x1a   :  { %27 = dma.hbm_to_vmem [thread:$0]  %s977_s0, 1024, %s22_s29, [#allocation3], %s877_s7, %s877_s7, %s878_s8  }
  0x1b   :  { %s879_s1 = smov [#allocation7]  }
  0x1c   :  { %s47_s11 = sshll.u32 %s879_s1, 4  ;;  %s48_s11 = int_to_ptr.vmem [resolvable:$true] %s47_s11 }
  0x1d   :  { %s813_s12 = scalar_lea.vmem %s48_s11, 1024  ;;  %p818_p11 = scmp.lt.s32.totalorder %s48_s11, %s48_s11 }
  0x1e   :  { %p814_p10 = scmp.ne.s32.totalorder %s48_s11, %s813_s12  ;;  %p819_p12 = scmp.lt.s32.totalorder %s813_s12, %s813_s12 }
  0x20   :  { %p820_p13 = por %p819_p12, %p818_p11 }
  0x22   :  { %p821_p0 = pnand %p820_p13, %p814_p10 }
  0x24   :  { %824 = shalt.err (!%p821_p0)
}
  0x25   :  { %53 = dma.hbm_to_vmem [thread:$0]  %s980_s3, 1024, %s48_s11, [#allocation6], %s874_s24, %s874_s24, %s875_s25  }
  0x26   :  { %865 = dma.done.wait [#allocation3], 1024  }
  0x27   :  { %866 = vsyncadd [#allocation3], 4294966272 }
  0x28   :  { %867 = dma.done.wait [#allocation6], 2048  }
  0x29   :  { %868 = vsyncadd [#allocation6], 4294965248  ;;  %v717_v0 = vld [vmem:[#allocation5 + $0x38] sm:$0xff]   ;;  %v718_v1 = vld [vmem:[#allocation5 + $0x30] sm:$0xff]  }
  0x2a   :  { %660 = vmatprep.subr.bf16.mxu0 %v717_v0  ;;  %v719_v2 = vld [vmem:[#allocation5 + $0x28] sm:$0xff]   ;;  %v720_v3 = vld [vmem:[#allocation5 + $0x20] sm:$0xff]   ;;  %v721_v7 = vld [vmem:[#allocation5 + $0x18] sm:$0xff]  }
  0x2b   :  { %661 = vmatpush3.bf16.msra.mxu0 %v717_v0  ;;  %v929_v4 = vld [vmem:[#allocation2] sm:$0xff]  ;;  %v931_v5 = vld [vmem:[#allocation2 + $0x8] sm:$0xff]  ;;  %v725_v8 = vld [vmem:[#allocation7 + $0x38] sm:$0xff]  }
  0x2c   :  { %662 = vmatprep.subr.bf16.mxu0 %v718_v1  ;;  %v74_v6 = vpack.c.bf16 %v931_v5, %v929_v4  ;;  %v726_v9 = vld [vmem:[#allocation7 + $0x30] sm:$0xff]   ;;  %684 = vmatprep.subr.bf16.mxu1 %v725_v8  ;;  %v727_v11 = vld [vmem:[#allocation7 + $0x28] sm:$0xff]   ;;  %v728_v12 = vld [vmem:[#allocation7 + $0x20] sm:$0xff]  }
  0x2d   :  { %v722_v10 = vld [vmem:[#allocation5 + $0x10] sm:$0xff]   ;;  %685 = vmatpush3.bf16.msra.mxu1 %v725_v8  ;;  %v723_v13 = vld [vmem:[#allocation5 + $0x8] sm:$0xff]   ;;  %v729_v14 = vld [vmem:[#allocation7 + $0x18] sm:$0xff]  }
  0x2e   :  { %676 = vmatprep.mubr.bf16.mxu0 %v74_v6  ;;  %686 = vmatprep.subr.bf16.mxu1 %v726_v9  ;;  %v724_v15 = vld [vmem:[#allocation5] sm:$0xff]   ;;  %v935_v16 = vld [vmem:[#allocation2 + $0x10] sm:$0xff]  ;;  %v937_v17 = vld [vmem:[#allocation2 + $0x18] sm:$0xff] }
  0x2f   :  { %663 = vmatpush3.bf16.msra.mxu0 %v718_v1  ;;  %v939_v18 = vld [vmem:[#allocation2 + $0x20] sm:$0xff]  ;;  %v941_v19 = vld [vmem:[#allocation2 + $0x28] sm:$0xff]  ;;  %v75_v20 = vpack.c.bf16 %v937_v17, %v935_v16  ;;  %v947_v22 = vld [vmem:[#allocation2 + $0x30] sm:$0xff] }
  0x30   :  { %664 = vmatprep.subr.bf16.mxu0 %v719_v2  ;;  %v76_v21 = vpack.c.bf16 %v941_v19, %v939_v18  ;;  %v949_v23 = vld [vmem:[#allocation2 + $0x38] sm:$0xff]  ;;  %v730_v25 = vld [vmem:[#allocation7 + $0x10] sm:$0xff]   ;;  %v731_v26 = vld [vmem:[#allocation7 + $0x8] sm:$0xff]  }
  0x31   :  { %687 = vmatpush3.bf16.msra.mxu1 %v726_v9  ;;  %v77_v24 = vpack.c.bf16 %v949_v23, %v947_v22  ;;  %v732_v27 = vld [vmem:[#allocation7] sm:$0xff]  }
  0x32   :  { %688 = vmatprep.subr.bf16.mxu1 %v727_v11  ;;  %v618_v28 = vld [vmem:[%s979_s2] ss:$0 sm:$0xff]  ;;  %s880_s2 = smov [#allocation9]  }
  0x33   :  { %665 = vmatpush3.bf16.msra.mxu0 %v719_v2  ;;  %s601_s15 = sshll.u32 %s880_s2, 4  ;;  %s602_s15 = int_to_ptr.vmem [resolvable:$true] %s601_s15 }
  0x34   :  { %666 = vmatprep.subr.bf16.mxu0 %v720_v3  ;;  %s825_s16 = scalar_lea.vmem %s602_s15, 1024  ;;  %p830_p2 = scmp.lt.s32.totalorder %s602_s15, %s602_s15 }
  0x35   :  { %689 = vmatpush3.bf16.msra.mxu1 %v727_v11  ;;  %p826_p1 = scmp.ne.s32.totalorder %s602_s15, %s825_s16  ;;  %p831_p3 = scmp.lt.s32.totalorder %s825_s16, %s825_s16 }
  0x36   :  { %690 = vmatprep.subr.bf16.mxu1 %v728_v12 }
  0x37   :  { %667 = vmatpush3.bf16.msra.mxu0 %v720_v3  ;;  %p832_p4 = por %p831_p3, %p830_p2 }
  0x38   :  { %668 = vmatprep.subr.bf16.mxu0 %v721_v7 }
  0x39   :  { %691 = vmatpush3.bf16.msra.mxu1 %v728_v12  ;;  %p833_p5 = pnand %p832_p4, %p826_p1 }
  0x3a   :  { %692 = vmatprep.subr.bf16.mxu1 %v729_v14 }
  0x3b   :  { %669 = vmatpush3.bf16.msra.mxu0 %v721_v7 }
  0x3c   :  { %670 = vmatprep.subr.bf16.mxu0 %v722_v10 }
  0x3d   :  { %693 = vmatpush3.bf16.msra.mxu1 %v729_v14 }
  0x3e   :  { %694 = vmatprep.subr.bf16.mxu1 %v730_v25 }
  0x3f   :  { %671 = vmatpush3.bf16.msra.mxu0 %v722_v10 }
  0x40   :  { %672 = vmatprep.subr.bf16.mxu0 %v723_v13 }
  0x41   :  { %695 = vmatpush3.bf16.msra.mxu1 %v730_v25 }
  0x42   :  { %696 = vmatprep.subr.bf16.mxu1 %v731_v26 }
  0x43   :  { %673 = vmatpush3.bf16.msra.mxu0 %v723_v13 }
  0x44   :  { %674 = vmatprep.subr.bf16.mxu0 %v724_v15 }
  0x45   :  { %697 = vmatpush3.bf16.msra.mxu1 %v731_v26 }
  0x46   :  { %698 = vmatprep.subr.bf16.mxu1 %v732_v27 }
  0x47   :  { %675 = vmatpush3.bf16.msra.mxu0 %v724_v15 }
  0x49   :  { %699 = vmatpush3.bf16.msra.mxu1 %v732_v27 }
  0x4a   :  { %677 = vmatmul.mubr.bf16.vlgmr.msra.gmra.mxu0 %v75_v20 }
  0x4b   :  { %680 = vmatprep.mubr.bf16.mxu0 %v76_v21 }
  0x52   :  { %681 = vmatmul.mubr.bf16.gmra.mxu0 %v77_v24 }
 0x10a   :  { %v678_v29 = vpop.f32.mrf.mxu0 }
 0x10b   :  { %v192_v30 = vadd.f32 %v678_v29, %v618_v28 }
 0x10c   :  { %v183_v31 = vpop.f32.mrf.mxu0 }
 0x10d   :  { %v216_v32 = vmax.f32 %v192_v30, 0.0  ;;  %v184_v33 = vadd.f32 %v618_v28, %v183_v31 }
 0x10e   :  { %v679_v34 = vpop.f32.mrf.mxu0 }
 0x10f   :  { %580 = vst [vmem:[#allocation9 + $0x10] sm:$0xff] %v216_v32  ;;  %v214_v35 = vmax.f32 %v184_v33, 0.0  ;;  %v195_v36 = vadd.f32 %v679_v34, %v618_v28 }
 0x110   :  { %v186_v37 = vpop.f32.mrf.mxu0 }
 0x111   :  { %578 = vst [vmem:[#allocation9] sm:$0xff] %v214_v35  ;;  %v217_v38 = vmax.f32 %v195_v36, 0.0  ;;  %v187_v39 = vadd.f32 %v618_v28, %v186_v37 }
 0x112   :  { %v682_v40 = vpop.f32.mrf.mxu0 }
 0x113   :  { %581 = vst [vmem:[#allocation9 + $0x18] sm:$0xff] %v217_v38  ;;  %v215_v41 = vmax.f32 %v187_v39, 0.0  ;;  %v208_v42 = vadd.f32 %v682_v40, %v618_v28  ;;  %v223_v47 = vpack.c.bf16 %v217_v38, %v216_v32 }
 0x114   :  { %v199_v43 = vpop.f32.mrf.mxu0 }
 0x115   :  { %579 = vst [vmem:[#allocation9 + $0x8] sm:$0xff] %v215_v41  ;;  %v220_v44 = vmax.f32 %v208_v42, 0.0  ;;  %v200_v45 = vadd.f32 %v618_v28, %v199_v43  ;;  %v222_v46 = vpack.c.bf16 %v215_v41, %v214_v35 }
 0x116   :  { %v683_v48 = vpop.f32.mrf.mxu0 }
 0x117   :  { %584 = vst [vmem:[#allocation9 + $0x30] sm:$0xff] %v220_v44  ;;  %v218_v49 = vmax.f32 %v200_v45, 0.0  ;;  %v211_v50 = vadd.f32 %v683_v48, %v618_v28  ;;  %700 = vmatprep.mubr.bf16.mxu1 %v222_v46 }
 0x118   :  { %v202_v51 = vpop.f32.mrf.mxu0  ;;  %701 = vmatmul.mubr.bf16.vlgmr.msra.gmra.mxu1 %v223_v47 }
 0x119   :  { %582 = vst [vmem:[#allocation9 + $0x20] sm:$0xff] %v218_v49  ;;  %v221_v52 = vmax.f32 %v211_v50, 0.0  ;;  %v203_v53 = vadd.f32 %v618_v28, %v202_v51 }
 0x11b   :  { %585 = vst [vmem:[#allocation9 + $0x38] sm:$0xff] %v221_v52  ;;  %v219_v54 = vmax.f32 %v203_v53, 0.0  ;;  %v225_v56 = vpack.c.bf16 %v221_v52, %v220_v44 }
 0x11d   :  { %v224_v55 = vpack.c.bf16 %v219_v54, %v218_v49  ;;  %583 = vst [vmem:[#allocation9 + $0x28] sm:$0xff] %v219_v54 }
 0x11f   :  { %704 = vmatprep.mubr.bf16.mxu1 %v224_v55 }
 0x120   :  { %705 = vmatmul.mubr.bf16.gmra.mxu1 %v225_v56 }
 0x121   :  { %836 = shalt.err (!%p833_p5)
}
 0x122   :  { %607 = dma.vmem_to_hbm [thread:$0]  %s602_s15, 1024, %s983_s6, [#allocation10], %s877_s7, %s877_s7, %s878_s8   ;;  %vm562_vm0 = vcmask 1041409   ;;  %vm564_vm1 = vcmask 1042434   ;;  %vm566_vm2 = vcmask 1043459   ;;  %vm568_vm3 = vcmask 1044484  }
 0x123   :  { %v627_v57 = vld [vmem:[%s981_s4] ss:$0 sm:$0xff]  ;;  %vm570_vm4 = vcmask 1045509   ;;  %vm572_vm5 = vcmask 1046534   ;;  %s881_s4 = smov [#allocation8]   ;;  %vm574_vm6 = vcmask 1047559  }
 0x124   :  { %s592_s6 = sshll.u32 %s881_s4, 4  ;;  %s593_s6 = int_to_ptr.vmem [resolvable:$true] %s592_s6 }
 0x125   :  { %s845_s21 = scalar_lea.vmem %s593_s6, 128  ;;  %p850_p7 = scmp.lt.s32.totalorder %s593_s6, %s593_s6 }
 0x126   :  { %p846_p6 = scmp.ne.s32.totalorder %s593_s6, %s845_s21  ;;  %p851_p8 = scmp.lt.s32.totalorder %s845_s21, %s845_s21 }
 0x128   :  { %p852_p9 = por %p851_p8, %p850_p7 }
 0x12a   :  { %p853_p10 = pnand %p852_p9, %p846_p6 }
 0x1d8   :  { %v702_v58 = vpop.f32.mrf.mxu1 }
 0x1d9   :  { %v340_v59 = vadd.f32 %v702_v58, %v627_v57 }
 0x1da   :  { %v331_v60 = vpop.f32.mrf.mxu1 }
 0x1db   :  { %v374_v61 = vrot.slane %v340_v59, 4  ;;  %v332_v62 = vadd.f32 %v627_v57, %v331_v60 }
 0x1dc   :  { %v703_v63 = vpop.f32.mrf.mxu1 }
 0x1dd   :  { %v375_v0 = vmax.f32 %v340_v59, %v374_v61  ;;  %v362_v1 = vrot.slane %v332_v62, 4  ;;  %v343_v2 = vadd.f32 %v703_v63, %v627_v57 }
 0x1de   :  { %v334_v3 = vpop.f32.mrf.mxu1 }
 0x1df   :  { %v376_v6 = vrot.slane %v375_v0, 2  ;;  %v363_v7 = vmax.f32 %v332_v62, %v362_v1  ;;  %v380_v8 = vrot.slane %v343_v2, 4  ;;  %v335_v9 = vadd.f32 %v627_v57, %v334_v3 }
 0x1e0   :  { %v706_v10 = vpop.f32.mrf.mxu1 }
 0x1e1   :  { %v377_v11 = vmax.f32 %v375_v0, %v376_v6  ;;  %v364_v12 = vrot.slane %v363_v7, 2  ;;  %v381_v13 = vmax.f32 %v343_v2, %v380_v8  ;;  %v368_v14 = vrot.slane %v335_v9, 4 }
 0x1e2   :  { %v356_v15 = vadd.f32 %v706_v10, %v627_v57  ;;  %v347_v20 = vpop.f32.mrf.mxu1 }
 0x1e3   :  { %v378_v21 = vrot.slane %v377_v11, 1  ;;  %v365_v24 = vmax.f32 %v363_v7, %v364_v12  ;;  %v382_v25 = vrot.slane %v381_v13, 2  ;;  %v369_v26 = vmax.f32 %v335_v9, %v368_v14 }
 0x1e4   :  { %v398_v27 = vrot.slane %v356_v15, 4  ;;  %v348_v28 = vadd.f32 %v627_v57, %v347_v20  ;;  %v707_v29 = vpop.f32.mrf.mxu1 }
 0x1e5   :  { %v379_v30 = vmax.f32 %v377_v11, %v378_v21  ;;  %v366_v31 = vrot.slane %v365_v24, 1  ;;  %v383_v32 = vmax.f32 %v381_v13, %v382_v25  ;;  %v370_v33 = vrot.slane %v369_v26, 2 }
 0x1e6   :  { %v399_v34 = vmax.f32 %v356_v15, %v398_v27  ;;  %v386_v35 = vrot.slane %v348_v28, 4  ;;  %v359_v36 = vadd.f32 %v707_v29, %v627_v57  ;;  %v350_v37 = vpop.f32.mrf.mxu1 }
 0x1e7   :  { %v412_v38 = vsub.f32 %v340_v59, %v379_v30  ;;  %v367_v39 = vmax.f32 %v365_v24, %v366_v31  ;;  %v384_v40 = vrot.slane %v383_v32, 1  ;;  %v371_v41 = vmax.f32 %v369_v26, %v370_v33 }
 0x1e8   :  { %v400_v42 = vrot.slane %v399_v34, 2  ;;  %v387_v43 = vmax.f32 %v348_v28, %v386_v35  ;;  %v404_v44 = vrot.slane %v359_v36, 4  ;;  %v351_v45 = vadd.f32 %v627_v57, %v350_v37 }
 0x1e9   :  { %v422_v46 = vmul.f32 1.442695, %v412_v38  ;;  %v410_v47 = vsub.f32 %v332_v62, %v367_v39  ;;  %v385_v48 = vmax.f32 %v383_v32, %v384_v40  ;;  %v372_v49 = vrot.slane %v371_v41, 1 }
 0x1ea   :  { %v401_v50 = vmax.f32 %v399_v34, %v400_v42  ;;  %v388_v51 = vrot.slane %v387_v43, 2  ;;  %v405_v52 = vmax.f32 %v359_v36, %v404_v44  ;;  %v392_v53 = vrot.slane %v351_v45, 4 }
 0x1eb   :  { %733 = vpow2.f32 %v422_v46  ;;  %v418_v54 = vmul.f32 1.442695, %v410_v47  ;;  %v413_v55 = vsub.f32 %v343_v2, %v385_v48  ;;  %v373_v56 = vmax.f32 %v371_v41, %v372_v49 }
 0x1ec   :  { %v402_v58 = vrot.slane %v401_v50, 1  ;;  %v389_v59 = vmax.f32 %v387_v43, %v388_v51  ;;  %v406_v60 = vrot.slane %v405_v52, 2  ;;  %v393_v61 = vmax.f32 %v351_v45, %v392_v53 }
 0x1ed   :  { %735 = vpow2.f32 %v418_v54  ;;  %v424_v63 = vmul.f32 1.442695, %v413_v55  ;;  %v411_v0 = vsub.f32 %v335_v9, %v373_v56 }
 0x1ee   :  { %v403_v57 = vmax.f32 %v401_v50, %v402_v58  ;;  %v390_v1 = vrot.slane %v389_v59, 1  ;;  %v407_v62 = vmax.f32 %v405_v52, %v406_v60  ;;  %v394_v3 = vrot.slane %v393_v61, 2 }
 0x1ef   :  { %737 = vpow2.f32 %v424_v63  ;;  %v420_v6 = vmul.f32 1.442695, %v411_v0 }
 0x1f0   :  { %v416_v7 = vsub.f32 %v356_v15, %v403_v57  ;;  %v391_v8 = vmax.f32 %v389_v59, %v390_v1  ;;  %v408_v10 = vrot.slane %v407_v62, 1  ;;  %v395_v11 = vmax.f32 %v393_v61, %v394_v3 }
 0x1f1   :  { %739 = vpow2.f32 %v420_v6 }
 0x1f2   :  { %v430_v2 = vmul.f32 1.442695, %v416_v7  ;;  %v414_v12 = vsub.f32 %v348_v28, %v391_v8  ;;  %v409_v13 = vmax.f32 %v407_v62, %v408_v10  ;;  %v396_v14 = vrot.slane %v395_v11, 1 }
 0x1f4   :  { %741 = vpow2.f32 %v430_v2  ;;  %v426_v20 = vmul.f32 1.442695, %v414_v12  ;;  %v417_v21 = vsub.f32 %v359_v36, %v409_v13  ;;  %v397_v24 = vmax.f32 %v395_v11, %v396_v14 }
 0x1f6   :  { %743 = vpow2.f32 %v426_v20  ;;  %v432_v9 = vmul.f32 1.442695, %v417_v21  ;;  %v415_v25 = vsub.f32 %v351_v45, %v397_v24 }
 0x1f8   :  { %v734_v26 = vpop.eup %733  ;;  %745 = vpow2.f32 %v432_v9  ;;  %v428_v27 = vmul.f32 1.442695, %v415_v25 }
 0x1f9   :  { %v446_v15 = vrot.slane %v734_v26, 4  ;;  %v484_v36 = vmul.f32 %v734_v26, %v935_v16 }
 0x1fa   :  { %v736_v29 = vpop.eup %735  ;;  %747 = vpow2.f32 %v428_v27 }
 0x1fb   :  { %v434_v30 = vrot.slane %v736_v29, 4  ;;  %v447_v35 = vadd.f32 %v734_v26, %v446_v15  ;;  %v482_v46 = vmul.f32 %v736_v29, %v929_v4  ;;  %v502_v49 = vrot.slane %v484_v36, 4 }
 0x1fc   :  { %v738_v31 = vpop.eup %737 }
 0x1fd   :  { %v435_v32 = vadd.f32 %v736_v29, %v434_v30  ;;  %v452_v33 = vrot.slane %v738_v31, 4  ;;  %v448_v44 = vrot.slane %v447_v35, 2  ;;  %v485_v55 = vmul.f32 %v738_v31, %v937_v17 }
 0x1fe   :  { %v740_v28 = vpop.eup %739  ;;  %v490_v61 = vrot.slane %v482_v46, 4  ;;  %v503_v57 = vadd.f32 %v502_v49, %v484_v36 }
 0x1ff   :  { %v440_v34 = vrot.slane %v740_v28, 4  ;;  %v453_v37 = vadd.f32 %v738_v31, %v452_v33  ;;  %v436_v40 = vrot.slane %v435_v32, 2  ;;  %v483_v53 = vmul.f32 %v740_v28, %v931_v5 }
 0x200   :  { %v449_v58 = vadd.f32 %v448_v44, %v447_v35  ;;  %v508_v21 = vrot.slane %v485_v55, 4  ;;  %v491_v25 = vadd.f32 %v490_v61, %v482_v46 }
 0x201   :  { %v742_v38 = vpop.eup %741  ;;  %v441_v39 = vadd.f32 %v740_v28, %v440_v34  ;;  %v454_v45 = vrot.slane %v453_v37, 2  ;;  %v437_v51 = vadd.f32 %v436_v40, %v435_v32  ;;  %v496_v6 = vrot.slane %v483_v53, 4 }
 0x202   :  { %v470_v41 = vrot.slane %v742_v38, 4  ;;  %v450_v17 = vrot.slane %v449_v58, 1  ;;  %v488_v12 = vmul.f32 %v742_v38, %v947_v22  ;;  %v509_v22 = vadd.f32 %v508_v21, %v485_v55 }
 0x203   :  { %v744_v42 = vpop.eup %743  ;;  %v442_v43 = vrot.slane %v441_v39, 2  ;;  %v455_v59 = vadd.f32 %v454_v45, %v453_v37  ;;  %v438_v1 = vrot.slane %v437_v51, 1  ;;  %v497_v29 = vadd.f32 %v496_v6, %v483_v53 }
 0x204   :  { %v458_v47 = vrot.slane %v744_v42, 4  ;;  %v471_v48 = vadd.f32 %v742_v38, %v470_v41  ;;  %v486_v3 = vmul.f32 %v744_v42, %v939_v18  ;;  %v451_v30 = vadd.f32 %v450_v17, %v449_v58 }
 0x205   :  { %v746_v50 = vpop.eup %745  ;;  %v443_v52 = vadd.f32 %v442_v43, %v441_v39  ;;  %v456_v11 = vrot.slane %v455_v59, 1  ;;  %v439_v24 = vadd.f32 %v438_v1, %v437_v51  ;;  %v526_v32 = vrot.slane %v488_v12, 4 }
 0x206   :  { %v459_v54 = vadd.f32 %v744_v42, %v458_v47  ;;  %v476_v16 = vrot.slane %v746_v50, 4  ;;  %v472_v60 = vrot.slane %v471_v48, 2  ;;  %v489_v20 = vmul.f32 %v746_v50, %v949_v23 }
 0x207   :  { %v748_v56 = vpop.eup %747  ;;  %v444_v62 = vrot.slane %v443_v52, 1  ;;  %v514_v18 = vrot.slane %v486_v3, 4  ;;  %v492_v37 = vrot.slane %v491_v25, 2  ;;  %749 = vrcp.f32 %v439_v24 }
 0x208   :  { %v460_v63 = vrot.slane %v459_v54, 2  ;;  %v464_v0 = vrot.slane %v748_v56, 4  ;;  %v477_v4 = vadd.f32 %v746_v50, %v476_v16  ;;  %v487_v10 = vmul.f32 %v748_v56, %v941_v19 }
 0x209   :  { %v473_v2 = vadd.f32 %v472_v60, %v471_v48  ;;  %v445_v26 = vadd.f32 %v444_v62, %v443_v52  ;;  %v457_v19 = vadd.f32 %v456_v11, %v455_v59  ;;  %v532_v34 = vrot.slane %v489_v20, 4 }
 0x20a   :  { %v461_v7 = vadd.f32 %v460_v63, %v459_v54  ;;  %v465_v5 = vadd.f32 %v748_v56, %v464_v0  ;;  %v478_v8 = vrot.slane %v477_v4, 2  ;;  %v520_v15 = vrot.slane %v487_v10, 4 }
 0x20b   :  { %v474_v31 = vrot.slane %v473_v2, 1  ;;  %v515_v23 = vadd.f32 %v514_v18, %v486_v3  ;;  %v498_v38 = vrot.slane %v497_v29, 2  ;;  %751 = vrcp.f32 %v445_v26 }
 0x20c   :  { %v466_v13 = vrot.slane %v465_v5, 2  ;;  %v479_v14 = vadd.f32 %v478_v8, %v477_v4  ;;  %v462_v9 = vrot.slane %v461_v7, 1  ;;  %v521_v39 = vadd.f32 %v520_v15, %v487_v10 }
 0x20d   :  { %v475_v40 = vadd.f32 %v474_v31, %v473_v2  ;;  %v504_v41 = vrot.slane %v503_v57, 2  ;;  %v527_v42 = vadd.f32 %v526_v32, %v488_v12  ;;  %753 = vrcp.f32 %v451_v30 }
 0x20e   :  { %v467_v27 = vadd.f32 %v466_v13, %v465_v5  ;;  %v480_v28 = vrot.slane %v479_v14, 1  ;;  %v463_v35 = vadd.f32 %v462_v9, %v461_v7  ;;  %v510_v44 = vrot.slane %v509_v22, 2 }
 0x20f   :  { %v533_v45 = vadd.f32 %v532_v34, %v489_v20  ;;  %755 = vrcp.f32 %v457_v19  ;;  %v516_v46 = vrot.slane %v515_v23, 2  ;;  %v493_v47 = vadd.f32 %v492_v37, %v491_v25 }
 0x210   :  { %v468_v33 = vrot.slane %v467_v27, 1  ;;  %v481_v43 = vadd.f32 %v480_v28, %v479_v14  ;;  %757 = vrcp.f32 %v463_v35  ;;  %v499_v48 = vadd.f32 %v498_v38, %v497_v29 }
 0x211   :  { %v522_v49 = vrot.slane %v521_v39, 2  ;;  %v505_v50 = vadd.f32 %v504_v41, %v503_v57  ;;  %v528_v51 = vrot.slane %v527_v42, 2  ;;  %v511_v52 = vadd.f32 %v510_v44, %v509_v22 }
 0x212   :  { %v469_v36 = vadd.f32 %v468_v33, %v467_v27  ;;  %v534_v53 = vrot.slane %v533_v45, 2  ;;  %v517_v54 = vadd.f32 %v516_v46, %v515_v23  ;;  %v494_v16 = vrot.slane %v493_v47, 1 }
 0x213   :  { %v500_v55 = vrot.slane %v499_v48, 1  ;;  %v523_v56 = vadd.f32 %v522_v49, %v521_v39  ;;  %v506_v58 = vrot.slane %v505_v50, 1  ;;  %v529_v59 = vadd.f32 %v528_v51, %v527_v42 }
 0x214   :  { %759 = vrcp.f32 %v469_v36  ;;  %v512_v60 = vrot.slane %v511_v52, 1  ;;  %v535_v61 = vadd.f32 %v534_v53, %v533_v45  ;;  %v518_v63 = vrot.slane %v517_v54, 1  ;;  %v750_v0 = vpop.eup %749 }
 0x215   :  { %761 = vrcp.f32 %v475_v40  ;;  %v495_v4 = vadd.f32 %v494_v16, %v493_v47  ;;  %v501_v1 = vadd.f32 %v500_v55, %v499_v48  ;;  %v524_v62 = vrot.slane %v523_v56, 1 }
 0x216   :  { %763 = vrcp.f32 %v481_v43  ;;  %v507_v57 = vadd.f32 %v506_v58, %v505_v50  ;;  %v530_v6 = vrot.slane %v529_v59, 1  ;;  %v513_v5 = vadd.f32 %v512_v60, %v511_v52 }
 0x217   :  { %v536_v8 = vrot.slane %v535_v61, 1  ;;  %v539_v10 = vmul.f32 %v750_v0, %v495_v4  ;;  %v519_v2 = vadd.f32 %v518_v63, %v517_v54  ;;  %v525_v14 = vadd.f32 %v524_v62, %v523_v56 }
 0x218   :  { %v752_v3 = vpop.eup %751  ;;  %v531_v9 = vadd.f32 %v530_v6, %v529_v59 }
 0x219   :  { %v541_v17 = vmul.f32 %v752_v3, %v501_v1  ;;  %v537_v27 = vadd.f32 %v536_v8, %v535_v61 }
 0x21a   :  { %v754_v7 = vpop.eup %753 }
 0x21b   :  { %v543_v12 = vmul.f32 %v754_v7, %v507_v57  ;;  %v563_v21 = vsel %vm562_vm0, %v541_v17, %v539_v10 }
 0x21c   :  { %v756_v11 = vpop.eup %755 }
 0x21d   :  { %v758_v13 = vpop.eup %757  ;;  %v545_v20 = vmul.f32 %v756_v11, %v513_v5  ;;  %v565_v18 = vsel %vm564_vm1, %v543_v12, %v563_v21 }
 0x21e   :  { %v547_v25 = vmul.f32 %v758_v13, %v519_v2 }
 0x21f   :  { %v567_v15 = vsel %vm566_vm2, %v545_v20, %v565_v18 }
 0x220   :  { %v569_v31 = vsel %vm568_vm3, %v547_v25, %v567_v15 }
 0x221   :  { %v760_v24 = vpop.eup %759 }
 0x222   :  { %v762_v26 = vpop.eup %761  ;;  %v549_v29 = vmul.f32 %v760_v24, %v525_v14 }
 0x223   :  { %v764_v30 = vpop.eup %763  ;;  %v551_v19 = vmul.f32 %v762_v26, %v531_v9 }
 0x224   :  { %v553_v32 = vmul.f32 %v764_v30, %v537_v27  ;;  %v571_v33 = vsel %vm570_vm4, %v549_v29, %v569_v31 }
 0x225   :  { %v573_v28 = vsel %vm572_vm5, %v551_v19, %v571_v33 }
 0x226   :  { %v575_v22 = vsel %vm574_vm6, %v553_v32, %v573_v28 }
 0x227   :  { %577 = vst [vmem:[#allocation8] sm:$0xff] %v575_v22 }
 0x228   :  { %856 = shalt.err (!%p853_p10)
}
 0x229   :  { %595 = dma.vmem_to_hbm [thread:$0]  %s593_s6, 128, %s982_s5, [#allocation4]  }
 0x22a   :  { %869 = dma.done.wait [#allocation4], 128  }
 0x22b   :  { %870 = vsyncadd [#allocation4], 4294967168 }
 0x22c   :  { %871 = dma.done.wait [#allocation10], 1024  }
 0x22d   :  { %872 = vsyncadd [#allocation10], 4294966272 }
 0x22e   :  { %614 = vsyncpa [#allocation3], 1 }
 0x22f   :  { %615 = vsyncpa [#allocation6], 1 }
 0x230   :  { %616 = vsyncpa [#allocation4], 1 }
 0x231   :  { %617 = vsyncpa [#allocation10], 1 }

</bundles_post_ra>
